<compile_context>
chip_gen: v6e
topology: v6e:2x2x1
jax: 0.10.0
libtpu: 0.0.40
codegen_flags: <defaults>
</compile_context>

<pallas_src>
import numpy as np
import jax
import jax.numpy as jnp
from jax import lax
from jax.experimental import pallas as pl
from jax.experimental.pallas import tpu as pltpu

# ----------------------------- problem sizes --------------------------------
B = 2            # batch
P = 3            # in_pathways
N = 32           # out_neurons
T = 8            # time steps carried by xs (module consumes only the last slice)
TMAX = 100.0     # Integrator Tmax
EPS = 1e-5
EI = (True, True, False)   # excitatory / inhibitory pathway mask (static)
SLAB_W = 128               # lane-dense parameter slab width


# --------------------------- parameter slab layout ---------------------------
def _build_layout():
    entries = [
        ('norm_g', P * B, N),    # custom-LayerNorm gamma, pre-broadcast to (P*B, N)
        ('norm_b', P * B, N),    # custom-LayerNorm beta
        ('aff_g', P * B, N),     # Affine gamma (init 0.1), pre-broadcast
        ('aff_b', P * B, N),     # Affine beta  (init 1.0), pre-broadcast
        ('x2h_Wt', N, N),        # Integrator x2h Linear weight, transposed (in, out)
        ('x2h_ln', 2, N),        # row 0: LN weight (0.1), row 1: LN bias (-log U(1,Tmax-1))
        ('h2h_Wt', N, 2 * N),    # Integrator h2h Linear weight, transposed (in, out)
        ('h2h_ln', 2, 2 * N),    # row 0: LN weight (0.1), row 1: LN bias (0)
    ]
    layout, off = {}, 0
    for name, r, c in entries:
        assert c <= SLAB_W
        layout[name] = (off, r, c)
        off += -(-r // 8) * 8          # 8-sublane aligned entries
    return layout, off


SLAB_LAYOUT, SLAB_ROWS = _build_layout()     # SLAB_ROWS == 112


# ------------------------------ fused kernel ---------------------------------
def _layer_kernel(x_ref, h_ref, p_ref, out_ref):
    # x_ref  : (P*B, N)        pathway inputs at the last time step, pathway-major rows
    # h_ref  : (B, N)          hidden state hx
    # p_ref  : (SLAB_ROWS,128) packed parameters (one DMA)
    # out_ref: (B, N)          new hidden state h

    def ld(name):
        off, r, c = SLAB_LAYOUT[name]
        return p_ref[off:off + r, 0:c]

    def ln(v):   # LayerNorm over the last dim (no affine), eps = 1e-5, biased variance
        mu = jnp.mean(v, axis=-1, keepdims=True)
        var = jnp.mean((v - mu) * (v - mu), axis=-1, keepdims=True)
        return (v - mu) * lax.rsqrt(var + EPS)

    x = x_ref[...]                                    # (P*B, N)
    hx = h_ref[...]                                   # (B, N)

    # Pathway LayerNorm (normalizes dim=2 of the stacked (B,P,N,T) tensor == the last
    # dim here) + per-(p,n) affine, batched over all P*B rows in ONE pass.
    xn = ln(x) * ld('norm_g') + ld('norm_b')          # (P*B, N)

    # Sigmoid gate from Affine(hx repeated over pathways); multiply with normed input.
    hx_rep = jnp.concatenate([hx] * P, axis=0)        # (P*B, N)
    gate = jax.nn.sigmoid(ld('aff_g') * hx_rep + ld('aff_b'))
    contrib = gate * xn                               # (P*B, N)

    # Pathway sum with the static excitatory / inhibitory split, then activation.
    if EI is None:
        s = contrib[0:B, :]
        for pth in range(1, P):
            s = s + contrib[pth * B:(pth + 1) * B, :]
        in_layer = jnp.maximum(s, 0.0)                               # relu(sum)
    else:
        exc = inh = None
        for pth in range(P):
            c = contrib[pth * B:(pth + 1) * B, :]
            if EI[pth]:
                exc = c if exc is None else exc + c
            else:
                inh = c if inh is None else inh + c
        exc = jnp.zeros((B, N), jnp.float32) if exc is None else exc
        inh = jnp.zeros((B, N), jnp.float32) if inh is None else inh
        in_layer = jnp.maximum(exc, 0.0) - jnp.maximum(inh, 0.0)     # relu(E)-relu(I)

    # ------------------------------ Integrator -------------------------------
    # bf16 operands on the MXU, f32 accumulation (per v6e/v7x feedback).
    h2h_ln = ld('h2h_ln')
    hh = jnp.dot(hx.astype(jnp.bfloat16), ld('h2h_Wt').astype(jnp.bfloat16),
                 preferred_element_type=jnp.float32)                 # (B, 2N)
    hh = ln(hh) * h2h_ln[0:1, :] + h2h_ln[1:2, :]
    h_i = hh[:, :N]
    h_g = hh[:, N:]

    xa = jnp.maximum(in_layer + h_i, 0.0)                            # activation(x + h_i)

    x2h_ln = ld('x2h_ln')
    xh = jnp.dot(xa.astype(jnp.bfloat16), ld('x2h_Wt').astype(jnp.bfloat16),
                 preferred_element_type=jnp.float32)                 # (B, N)
    xh = ln(xh) * x2h_ln[0:1, :] + x2h_ln[1:2, :]

    g = jax.nn.sigmoid(xh + h_g)
    out_ref[...] = (1.0 - g) * hx + g * xa


# ------------------------------- parameters ----------------------------------
def init_params(key):
    """Parameters with the same init semantics as the PyTorch module."""
    k1, k2, k3 = jax.random.split(key, 3)
    return {
        # custom LayerNorm affine (shape [P, N, 1] squeezed), standard init assumed
        'norm_g': jnp.ones((P, N), jnp.float32),
        'norm_b': jnp.zeros((P, N), jnp.float32),
        # Affine([P, N], init_gamma=0.1, init_beta=1)
        'aff_g': jnp.full((P, N), 0.1, jnp.float32),
        'aff_b': jnp.full((P, N), 1.0, jnp.float32),
        # Integrator: x2h = Linear(N, N, bias=False) + LayerNorm(N)
        'x2h_W': (0.2 * jax.random.normal(k1, (N, N))).astype(jnp.float32),   # (out, in)
        'x2h_ln_w': jnp.full((N,), 0.1, jnp.float32),
        'x2h_ln_b': (-jnp.log(jax.random.uniform(
            k2, (N,), minval=1.0, maxval=TMAX - 1.0))).astype(jnp.float32),
        # Integrator: h2h = Linear(N, 2N, bias=False) + LayerNorm(2N)
        'h2h_W': (0.2 * jax.random.normal(k3, (2 * N, N))).astype(jnp.float32),  # (out, in)
        'h2h_ln_w': jnp.full((2 * N,), 0.1, jnp.float32),
        'h2h_ln_b': jnp.zeros((2 * N,), jnp.float32),
    }


def pack_params(p):
    """Pack every parameter into one lane-dense f32 (SLAB_ROWS, 128) slab (done once)."""
    def rep(v):    # (P, N) -> (P*B, N); row index p*B + b holds pathway p's vector
        return jnp.repeat(jnp.asarray(v, jnp.float32), B, axis=0)

    vals = {
        'norm_g': rep(p['norm_g']),
        'norm_b': rep(p['norm_b']),
        'aff_g': rep(p['aff_g']),
        'aff_b': rep(p['aff_b']),
        'x2h_Wt': jnp.transpose(p['x2h_W']),                       # (N, N)
        'x2h_ln': jnp.stack([p['x2h_ln_w'], p['x2h_ln_b']], axis=0),
        'h2h_Wt': jnp.transpose(p['h2h_W']),                       # (N, 2N)
        'h2h_ln': jnp.stack([p['h2h_ln_w'], p['h2h_ln_b']], axis=0),
    }
    slab = jnp.zeros((SLAB_ROWS, SLAB_W), jnp.float32)
    for name, (off, r, c) in SLAB_LAYOUT.items():
        v = jnp.asarray(vals[name], jnp.float32)
        assert v.shape == (r, c), (name, v.shape, (r, c))
        slab = slab.at[off:off + r, 0:c].set(v)
    return slab


# ------------------------------ full forward ---------------------------------
def layer_forward(pslab, xs_stacked, init_h):
    # xs_stacked: (B, P, N, T)  == torch.stack(xs, dim=1)
    # init_h    : (B, N)
    # The module only consumes xs[..., -1]; the per-neuron LayerNorm is applied
    # independently per time step, so slicing first is mathematically identical.
    xx = xs_stacked[..., -1]                                    # (B, P, N)
    x_packed = jnp.transpose(xx, (1, 0, 2)).reshape(P * B, N)   # pathway-major rows

    h = pl.pallas_call(
        _layer_kernel,
        in_specs=[pl.BlockSpec(memory_space=pltpu.MemorySpace.VMEM)] * 3,
        out_specs=pl.BlockSpec(memory_space=pltpu.MemorySpace.VMEM),
        out_shape=jax.ShapeDtypeStruct((B, N), jnp.float32),
    )(x_packed, init_h, pslab)

    return h[:, :, None]        # torch.stack(hiddens[1:], dim=2) -> (B, N, 1)


# ------------------------- pure-JAX reference (f32) ---------------------------
def _ln_ref(v):
    mu = jnp.mean(v, axis=-1, keepdims=True)
    var = jnp.var(v, axis=-1, keepdims=True)
    return (v - mu) / jnp.sqrt(var + EPS)


def layer_reference(p, xs_stacked, init_h):
    x = xs_stacked                                              # (B, P, N, T)
    mu = jnp.mean(x, axis=2, keepdims=True)
    var = jnp.var(x, axis=2, keepdims=True)
    xn = (x - mu) / jnp.sqrt(var + EPS)
    xn = xn * p['norm_g'][None, :, :, None] + p['norm_b'][None, :, :, None]
    xx = xn[..., -1]                                            # (B, P, N)
    hx = init_h
    g = jax.nn.sigmoid(p['aff_g'][None] * hx[:, None, :] + p['aff_b'][None])
    in_layer = g * xx
    ei = jnp.asarray(EI)
    exc = jnp.sum(jnp.where(ei[None, :, None], in_layer, 0.0), axis=1)
    inh = jnp.sum(jnp.where(ei[None, :, None], 0.0, in_layer), axis=1)
    in_layer = jnp.maximum(exc, 0.0) - jnp.maximum(inh, 0.0)
    # Integrator
    hh = hx @ p['h2h_W'].T
    hh = _ln_ref(hh) * p['h2h_ln_w'] + p['h2h_ln_b']
    h_i, h_g = hh[:, :N], hh[:, N:]
    xa = jnp.maximum(in_layer + h_i, 0.0)
    xh = xa @ p['x2h_W'].T
    xh = _ln_ref(xh) * p['x2h_ln_w'] + p['x2h_ln_b']
    gg = jax.nn.sigmoid(xh + h_g)
    h = (1.0 - gg) * hx + gg * xa
    return h[:, :, None]


# ---------------------------------- main --------------------------------------
if __name__ == "__main__":
    key = jax.random.PRNGKey(0)
    kp, kx, kh = jax.random.split(key, 3)
    params = init_params(kp)
    pslab = pack_params(params)       # one-time packing, outside the jitted forward

    xs = [jax.random.normal(k, (B, N, T), jnp.float32)
          for k in jax.random.split(kx, P)]          # P pathway inputs, each (B, N, T)
    xs_stacked = jnp.stack(xs, axis=1)               # (B, P, N, T)
    init_h = 0.1 * jax.random.normal(kh, (B, N), jnp.float32)

    fwd = jax.jit(layer_forward)
    h = fwd(pslab, xs_stacked, init_h)
    jax.block_until_ready(h)

    assert h.shape == (B, N, 1)
    assert bool(jnp.all(jnp.isfinite(h)))

    # Correctness check against the pure-JAX f32 reference (generous tolerance to
    # absorb the bf16 MXU-operand cast).
    ref = layer_reference(params, xs_stacked, init_h)
    np.testing.assert_allclose(np.asarray(h), np.asarray(ref), atol=5e-2, rtol=5e-2)

    print("KERNEL_OK")
</pallas_src>

<mosaic_0001>
module attributes {stable_mosaic.version = 11 : i64} {
  func.func @_layer_kernel(%arg0: memref<6x32xf32, #tpu.memory_space<vmem>>, %arg1: memref<2x32xf32, #tpu.memory_space<vmem>>, %arg2: memref<112x128xf32, #tpu.memory_space<vmem>>, %arg3: memref<2x32xf32, #tpu.memory_space<vmem>>) attributes {dimension_semantics = [], scalar_prefetch = 0 : i64, scratch_operands = 0 : i64, tpu.core_type = #tpu.core_type<tc>} {
    %c0 = arith.constant 0 : index
    %c0_0 = arith.constant 0 : index
    %0 = vector.load %arg0[%c0, %c0_0] : memref<6x32xf32, #tpu.memory_space<vmem>>, vector<6x32xf32>
    %c0_1 = arith.constant 0 : index
    %c0_2 = arith.constant 0 : index
    %1 = vector.load %arg1[%c0_1, %c0_2] : memref<2x32xf32, #tpu.memory_space<vmem>>, vector<2x32xf32>
    %cst = arith.constant dense<0.000000e+00> : vector<6xf32>
    %2 = vector.multi_reduction <add>, %0, %cst [1] : vector<6x32xf32> to vector<6xf32>
    %3 = vector.shape_cast %2 : vector<6xf32> to vector<6x1xf32>
    %cst_3 = arith.constant 3.200000e+01 : f32
    %4 = vector.broadcast %cst_3 : f32 to vector<6x1xf32>
    %5 = arith.divf %3, %4 : vector<6x1xf32>
    %6 = vector.broadcast %5 : vector<6x1xf32> to vector<6x32xf32>
    %7 = arith.subf %0, %6 : vector<6x32xf32>
    %8 = vector.broadcast %5 : vector<6x1xf32> to vector<6x32xf32>
    %9 = arith.subf %0, %8 : vector<6x32xf32>
    %10 = arith.mulf %7, %9 : vector<6x32xf32>
    %cst_4 = arith.constant dense<0.000000e+00> : vector<6xf32>
    %11 = vector.multi_reduction <add>, %10, %cst_4 [1] : vector<6x32xf32> to vector<6xf32>
    %12 = vector.shape_cast %11 : vector<6xf32> to vector<6x1xf32>
    %cst_5 = arith.constant 3.200000e+01 : f32
    %13 = vector.broadcast %cst_5 : f32 to vector<6x1xf32>
    %14 = arith.divf %12, %13 : vector<6x1xf32>
    %15 = vector.broadcast %5 : vector<6x1xf32> to vector<6x32xf32>
    %16 = arith.subf %0, %15 : vector<6x32xf32>
    %cst_6 = arith.constant 9.99999974E-6 : f32
    %17 = vector.broadcast %cst_6 : f32 to vector<6x1xf32>
    %18 = arith.addf %14, %17 : vector<6x1xf32>
    %19 = math.rsqrt %18 : vector<6x1xf32>
    %20 = vector.broadcast %19 : vector<6x1xf32> to vector<6x32xf32>
    %21 = arith.mulf %16, %20 : vector<6x32xf32>
    %c0_7 = arith.constant 0 : index
    %c0_8 = arith.constant 0 : index
    %22 = vector.load %arg2[%c0_7, %c0_8] : memref<112x128xf32, #tpu.memory_space<vmem>>, vector<6x32xf32>
    %23 = arith.mulf %21, %22 : vector<6x32xf32>
    %c8 = arith.constant 8 : index
    %c0_9 = arith.constant 0 : index
    %24 = vector.load %arg2[%c8, %c0_9] : memref<112x128xf32, #tpu.memory_space<vmem>>, vector<6x32xf32>
    %25 = arith.addf %23, %24 : vector<6x32xf32>
    %26 = tpu.concatenate %1, %1, %1 in 0 : vector<2x32xf32>, vector<2x32xf32>, vector<2x32xf32> -> vector<6x32xf32>
    %c16 = arith.constant 16 : index
    %c0_10 = arith.constant 0 : index
    %27 = vector.load %arg2[%c16, %c0_10] : memref<112x128xf32, #tpu.memory_space<vmem>>, vector<6x32xf32>
    %28 = arith.mulf %27, %26 : vector<6x32xf32>
    %c24 = arith.constant 24 : index
    %c0_11 = arith.constant 0 : index
    %29 = vector.load %arg2[%c24, %c0_11] : memref<112x128xf32, #tpu.memory_space<vmem>>, vector<6x32xf32>
    %30 = arith.addf %28, %29 : vector<6x32xf32>
    %31 = arith.negf %30 : vector<6x32xf32>
    %32 = math.exp %31 : vector<6x32xf32>
    %cst_12 = arith.constant 1.000000e+00 : f32
    %33 = vector.broadcast %cst_12 : f32 to vector<6x32xf32>
    %34 = arith.addf %33, %32 : vector<6x32xf32>
    %35 = arith.divf %33, %34 : vector<6x32xf32>
    %36 = arith.mulf %35, %25 : vector<6x32xf32>
    %37 = vector.extract_strided_slice %36 {offsets = [0, 0], sizes = [2, 32], strides = [1, 1]} : vector<6x32xf32> to vector<2x32xf32>
    %38 = vector.extract_strided_slice %36 {offsets = [2, 0], sizes = [2, 32], strides = [1, 1]} : vector<6x32xf32> to vector<2x32xf32>
    %39 = arith.addf %37, %38 : vector<2x32xf32>
    %40 = vector.extract_strided_slice %36 {offsets = [4, 0], sizes = [2, 32], strides = [1, 1]} : vector<6x32xf32> to vector<2x32xf32>
    %cst_13 = arith.constant 0.000000e+00 : f32
    %41 = vector.broadcast %cst_13 : f32 to vector<2x32xf32>
    %42 = arith.maximumf %39, %41 : vector<2x32xf32>
    %cst_14 = arith.constant 0.000000e+00 : f32
    %43 = vector.broadcast %cst_14 : f32 to vector<2x32xf32>
    %44 = arith.maximumf %40, %43 : vector<2x32xf32>
    %45 = arith.subf %42, %44 : vector<2x32xf32>
    %c104 = arith.constant 104 : index
    %c0_15 = arith.constant 0 : index
    %46 = vector.load %arg2[%c104, %c0_15] : memref<112x128xf32, #tpu.memory_space<vmem>>, vector<2x64xf32>
    %47 = arith.truncf %1 : vector<2x32xf32> to vector<2x32xbf16>
    %c72 = arith.constant 72 : index
    %c0_16 = arith.constant 0 : index
    %48 = vector.load %arg2[%c72, %c0_16] : memref<112x128xf32, #tpu.memory_space<vmem>>, vector<32x64xf32>
    %49 = arith.truncf %48 : vector<32x64xf32> to vector<32x64xbf16>
    %cst_17 = arith.constant dense<0.000000e+00> : vector<2x64xf32>
    %50 = tpu.matmul %47, %49, %cst_17 {dimension_numbers = #tpu.dot_dimension_numbers<[1], [0], [0], [1], [0, 0, 1, 1], [], []>} : vector<2x32xbf16>, vector<32x64xbf16>, vector<2x64xf32> -> vector<2x64xf32>
    %cst_18 = arith.constant dense<0.000000e+00> : vector<2xf32>
    %51 = vector.multi_reduction <add>, %50, %cst_18 [1] : vector<2x64xf32> to vector<2xf32>
    %52 = vector.shape_cast %51 : vector<2xf32> to vector<2x1xf32>
    %cst_19 = arith.constant 6.400000e+01 : f32
    %53 = vector.broadcast %cst_19 : f32 to vector<2x1xf32>
    %54 = arith.divf %52, %53 : vector<2x1xf32>
    %55 = vector.broadcast %54 : vector<2x1xf32> to vector<2x64xf32>
    %56 = arith.subf %50, %55 : vector<2x64xf32>
    %57 = vector.broadcast %54 : vector<2x1xf32> to vector<2x64xf32>
    %58 = arith.subf %50, %57 : vector<2x64xf32>
    %59 = arith.mulf %56, %58 : vector<2x64xf32>
    %cst_20 = arith.constant dense<0.000000e+00> : vector<2xf32>
    %60 = vector.multi_reduction <add>, %59, %cst_20 [1] : vector<2x64xf32> to vector<2xf32>
    %61 = vector.shape_cast %60 : vector<2xf32> to vector<2x1xf32>
    %cst_21 = arith.constant 6.400000e+01 : f32
    %62 = vector.broadcast %cst_21 : f32 to vector<2x1xf32>
    %63 = arith.divf %61, %62 : vector<2x1xf32>
    %64 = vector.broadcast %54 : vector<2x1xf32> to vector<2x64xf32>
    %65 = arith.subf %50, %64 : vector<2x64xf32>
    %cst_22 = arith.constant 9.99999974E-6 : f32
    %66 = vector.broadcast %cst_22 : f32 to vector<2x1xf32>
    %67 = arith.addf %63, %66 : vector<2x1xf32>
    %68 = math.rsqrt %67 : vector<2x1xf32>
    %69 = vector.broadcast %68 : vector<2x1xf32> to vector<2x64xf32>
    %70 = arith.mulf %65, %69 : vector<2x64xf32>
    %71 = vector.extract_strided_slice %46 {offsets = [0, 0], sizes = [1, 64], strides = [1, 1]} : vector<2x64xf32> to vector<1x64xf32>
    %72 = vector.broadcast %71 : vector<1x64xf32> to vector<2x64xf32>
    %73 = arith.mulf %70, %72 : vector<2x64xf32>
    %74 = vector.extract_strided_slice %46 {offsets = [1, 0], sizes = [1, 64], strides = [1, 1]} : vector<2x64xf32> to vector<1x64xf32>
    %75 = vector.broadcast %74 : vector<1x64xf32> to vector<2x64xf32>
    %76 = arith.addf %73, %75 : vector<2x64xf32>
    %77 = vector.extract_strided_slice %76 {offsets = [0, 0], sizes = [2, 32], strides = [1, 1]} : vector<2x64xf32> to vector<2x32xf32>
    %78 = vector.extract_strided_slice %76 {offsets = [0, 32], sizes = [2, 32], strides = [1, 1]} : vector<2x64xf32> to vector<2x32xf32>
    %79 = arith.addf %45, %77 : vector<2x32xf32>
    %cst_23 = arith.constant 0.000000e+00 : f32
    %80 = vector.broadcast %cst_23 : f32 to vector<2x32xf32>
    %81 = arith.maximumf %79, %80 : vector<2x32xf32>
    %c64 = arith.constant 64 : index
    %c0_24 = arith.constant 0 : index
    %82 = vector.load %arg2[%c64, %c0_24] : memref<112x128xf32, #tpu.memory_space<vmem>>, vector<2x32xf32>
    %83 = arith.truncf %81 : vector<2x32xf32> to vector<2x32xbf16>
    %c32 = arith.constant 32 : index
    %c0_25 = arith.constant 0 : index
    %84 = vector.load %arg2[%c32, %c0_25] : memref<112x128xf32, #tpu.memory_space<vmem>>, vector<32x32xf32>
    %85 = arith.truncf %84 : vector<32x32xf32> to vector<32x32xbf16>
    %cst_26 = arith.constant dense<0.000000e+00> : vector<2x32xf32>
    %86 = tpu.matmul %83, %85, %cst_26 {dimension_numbers = #tpu.dot_dimension_numbers<[1], [0], [0], [1], [0, 0, 1, 1], [], []>} : vector<2x32xbf16>, vector<32x32xbf16>, vector<2x32xf32> -> vector<2x32xf32>
    %cst_27 = arith.constant dense<0.000000e+00> : vector<2xf32>
    %87 = vector.multi_reduction <add>, %86, %cst_27 [1] : vector<2x32xf32> to vector<2xf32>
    %88 = vector.shape_cast %87 : vector<2xf32> to vector<2x1xf32>
    %cst_28 = arith.constant 3.200000e+01 : f32
    %89 = vector.broadcast %cst_28 : f32 to vector<2x1xf32>
    %90 = arith.divf %88, %89 : vector<2x1xf32>
    %91 = vector.broadcast %90 : vector<2x1xf32> to vector<2x32xf32>
    %92 = arith.subf %86, %91 : vector<2x32xf32>
    %93 = vector.broadcast %90 : vector<2x1xf32> to vector<2x32xf32>
    %94 = arith.subf %86, %93 : vector<2x32xf32>
    %95 = arith.mulf %92, %94 : vector<2x32xf32>
    %cst_29 = arith.constant dense<0.000000e+00> : vector<2xf32>
    %96 = vector.multi_reduction <add>, %95, %cst_29 [1] : vector<2x32xf32> to vector<2xf32>
    %97 = vector.shape_cast %96 : vector<2xf32> to vector<2x1xf32>
    %cst_30 = arith.constant 3.200000e+01 : f32
    %98 = vector.broadcast %cst_30 : f32 to vector<2x1xf32>
    %99 = arith.divf %97, %98 : vector<2x1xf32>
    %100 = vector.broadcast %90 : vector<2x1xf32> to vector<2x32xf32>
    %101 = arith.subf %86, %100 : vector<2x32xf32>
    %cst_31 = arith.constant 9.99999974E-6 : f32
    %102 = vector.broadcast %cst_31 : f32 to vector<2x1xf32>
    %103 = arith.addf %99, %102 : vector<2x1xf32>
    %104 = math.rsqrt %103 : vector<2x1xf32>
    %105 = vector.broadcast %104 : vector<2x1xf32> to vector<2x32xf32>
    %106 = arith.mulf %101, %105 : vector<2x32xf32>
    %107 = vector.extract_strided_slice %82 {offsets = [0, 0], sizes = [1, 32], strides = [1, 1]} : vector<2x32xf32> to vector<1x32xf32>
    %108 = vector.broadcast %107 : vector<1x32xf32> to vector<2x32xf32>
    %109 = arith.mulf %106, %108 : vector<2x32xf32>
    %110 = vector.extract_strided_slice %82 {offsets = [1, 0], sizes = [1, 32], strides = [1, 1]} : vector<2x32xf32> to vector<1x32xf32>
    %111 = vector.broadcast %110 : vector<1x32xf32> to vector<2x32xf32>
    %112 = arith.addf %109, %111 : vector<2x32xf32>
    %113 = arith.addf %112, %78 : vector<2x32xf32>
    %114 = arith.negf %113 : vector<2x32xf32>
    %115 = math.exp %114 : vector<2x32xf32>
    %cst_32 = arith.constant 1.000000e+00 : f32
    %116 = vector.broadcast %cst_32 : f32 to vector<2x32xf32>
    %117 = arith.addf %116, %115 : vector<2x32xf32>
    %118 = arith.divf %116, %117 : vector<2x32xf32>
    %cst_33 = arith.constant 1.000000e+00 : f32
    %119 = vector.broadcast %cst_33 : f32 to vector<2x32xf32>
    %120 = arith.subf %119, %118 : vector<2x32xf32>
    %121 = arith.mulf %120, %1 : vector<2x32xf32>
    %122 = arith.mulf %118, %81 : vector<2x32xf32>
    %123 = arith.addf %121, %122 : vector<2x32xf32>
    %c0_34 = arith.constant 0 : index
    %c0_35 = arith.constant 0 : index
    %124 = vector.load %arg3[%c0_34, %c0_35] : memref<2x32xf32, #tpu.memory_space<vmem>>, vector<2x32xf32>
    tpu.vector_store %arg3[%c0_34, %c0_35], %123 {strides = array<i32>} : memref<2x32xf32, #tpu.memory_space<vmem>>, vector<2x32xf32>,
    return
  }
}

</mosaic_0001>

<bundles_post_ra>
// kernel: layer_forward.1
= control target key start
LH: loop header
LB: loop body
LE: loop exit
PB: predicated region body
PF: predicated region fallthrough
CT: control target
= control target key end

     0   :  { %8 = vsyncpa [#allocation3], 0  ;;  %s411_s0 = inlined_call_operand.vmem [shape: f32[6,32], index: 0, kind: input, shape index: {}]   ;;  %s412_s1 = inlined_call_operand.vmem [shape: f32[2,32], index: 1, kind: input, shape index: {}]   ;;  %s413_s2 = inlined_call_operand.hbm [shape: f32[112,128], index: 2, kind: input, shape index: {}]   ;;  %s414_s3 = inlined_call_operand.hbm [shape: f32[2,32], index: 3, kind: output, shape index: {}]  }
   0x1   :  { %9 = vsyncpa [#allocation4], 0  ;;  %s357_s12 = smov [#allocation2]  }
   0x2   :  { %s19_s13 = sshll.u32 %s357_s12, 4  ;;  %s20_s13 = int_to_ptr.vmem [resolvable:$true] %s19_s13 }
   0x3   :  { %s321_s14 = scalar_lea.vmem %s20_s13, 1792  ;;  %p326_p1 = scmp.lt.s32.totalorder %s20_s13, %s20_s13 }
   0x4   :  { %p322_p0 = scmp.ne.s32.totalorder %s20_s13, %s321_s14  ;;  %p327_p2 = scmp.lt.s32.totalorder %s321_s14, %s321_s14 }
   0x6   :  { %p328_p3 = por %p327_p2, %p326_p1 }
   0x8   :  { %p329_p4 = pnand %p328_p3, %p322_p0 }
   0xa   :  { %332 = shalt.err (!%p329_p4)
}
   0xb   :  { %s358_s15 = smov 128   ;;  %s359_s16 = smov 8  }
   0xc   :  { %25 = dma.hbm_to_vmem [thread:$0]  %s413_s2, 1792, %s20_s13, [#allocation3], %s358_s15, %s358_s15, %s359_s16  }
   0xd   :  { %353 = dma.done.wait [#allocation3], 1792  }
   0xe   :  { %354 = vsyncadd [#allocation3], 4294965504  ;;  %v360_v0 = vmov 0.0   ;;  %vm361_vm0 = vmmov 0   ;;  %v85_v1 = vld [vmem:[#allocation2 + $0x58] sm:$0xff]  ;;  %v86_v2 = vld [vmem:[#allocation2 + $0x60] sm:$0xff]  ;;  %v148_v56 = vlaneseq }
   0xf   :  { %276 = vmatprep.subr.bf16.mxu0 %v360_v0  ;;  %280 = vmatprep.mubr.msk.bf16.mxu0 %vm361_vm0, %v360_v0  ;;  %v83_v3 = vld [vmem:[#allocation2 + $0x48] sm:$0xff]  ;;  %vm32_vm1 = vcmask 259072   ;;  %v88_v4 = vpack.c.bf16 %v86_v2, %v85_v1  ;;  %v84_v5 = vld [vmem:[#allocation2 + $0x50] sm:$0xff]  ;;  %v30_v6 = vld [vmem:[%s411_s0] sm:$0x3f]  ;;  %vm89_vm2 = vcmask 261120  }
  0x10   :  { %284 = vmatprep.subr.bf16.mxu1 %v360_v0  ;;  %288 = vmatprep.mubr.msk.bf16.mxu1 %vm361_vm0, %v360_v0  ;;  %v87_v7 = vpack.c.bf16 %v84_v5, %v83_v3  ;;  %v393_v8 = vld [vmem:[%s412_s1] sm:$0x3]  ;;  %v33_v9 = vsel %vm32_vm1, %v30_v6, 0.0  ;;  %vm133_vm3 = vcmask 517120   ;;  %v164_v26 = vld [vmem:[#allocation2 + $0x30] sm:$0xff]  ;;  %v165_v27 = vld [vmem:[#allocation2 + $0x38] sm:$0xff] }
  0x11   :  { %277 = vmatpush3.bf16.msra.mxu0 %v88_v4  ;;  %34 = vadd.xlane.f32.xlu0 %v33_v9  ;;  %v82_v10 = vpack.c.bf16 %v393_v8, %v393_v8  ;;  %v162_v28 = vld [vmem:[#allocation2 + $0x20] sm:$0xff]  ;;  %v167_v29 = vpack.c.bf16 %v165_v27, %v164_v26  ;;  %v163_v30 = vld [vmem:[#allocation2 + $0x28] sm:$0xff]  ;;  %v52_v32 = vrot.slane %v393_v8, 6  ;;  %vm56_vm4 = vcmask 1041408   ;;  %v60_v36 = vld [vmem:[#allocation2 + $0x10] sm:$0x3f] }
  0x12   :  { %278 = vmatprep.subr.bf16.mxu0 %v360_v0  ;;  %v166_v31 = vpack.c.bf16 %v163_v30, %v162_v28  ;;  %v54_v33 = vrot.slane %v393_v8, 4  ;;  %vm58_vm5 = vcmask 1043456   ;;  %v62_v38 = vld [vmem:[#allocation2 + $0x18] sm:$0x3f]  ;;  %v47_v48 = vld [vmem:[#allocation2] sm:$0x3f] }
  0x13   :  { %285 = vmatpush3.bf16.msra.mxu1 %v167_v29  ;;  %v57_v34 = vsel %vm56_vm4, %v393_v8, %v52_v32  ;;  %v49_v50 = vld [vmem:[#allocation2 + $0x8] sm:$0x3f]  ;;  %v149_v58 = vshrl.u32 %v148_v56, 7  ;;  %vm211_vm6 = vcmask 254976   ;;  %s362_s0 = smov 96   ;;  %s363_s1 = smov [#allocation5]  }
  0x14   :  { %286 = vmatprep.subr.bf16.mxu1 %v360_v0  ;;  %v59_v35 = vsel %vm58_vm5, %v57_v34, %v54_v33  ;;  %v81_v61 = vld [vmem:[#allocation2 + $0x68] sm:$0x3]  ;;  %v160_v27 = vld [vmem:[#allocation2 + $0x40] sm:$0x3]  ;;  %s257_s22 = sshll.u32 %s363_s1, 4  ;;  %s258_s22 = int_to_ptr.vmem [resolvable:$true] %s257_s22 }
  0x15   :  { %279 = vmatpush3.bf16.msra.mxu0 %v87_v7  ;;  %v61_v37 = vmul.f32 %v60_v36, %v59_v35  ;;  %v150_v60 = vsub.s32 0, %v149_v58  ;;  %v155_v0 = vsub.s32 1, %v149_v58  ;;  %s333_s23 = scalar_lea.vmem %s258_s22, 32  ;;  %p338_p6 = scmp.lt.s32.totalorder %s258_s22, %s258_s22 }
  0x16   :  { %p334_p5 = scmp.ne.s32.totalorder %s258_s22, %s333_s23  ;;  %p339_p7 = scmp.lt.s32.totalorder %s333_s23, %s333_s23 }
  0x17   :  { %287 = vmatpush3.bf16.msra.mxu1 %v166_v31  ;;  %v63_v39 = vadd.f32 %v62_v38, %v61_v37  ;;  %v151_v1 = vrot.slane %v81_v61, %v150_v60  ;;  %v228_v28 = vrot.slane %v160_v27, %v150_v60  ;;  %v233_v30 = vrot.slane %v160_v27, %v155_v0 }
  0x18   :  { %281 = vmatmul.mubr.msk.bf16.vlgmr.msra.gmra.mxu0 %vm89_vm2, %v82_v10  ;;  %p340_p8 = por %p339_p7, %p338_p6 }
  0x19   :  { %v266_v40 = vmul.f32 -1.442695, %v63_v39 }
  0x1a   :  { %p341_p9 = pnand %p340_p8, %p334_p5 }
  0x1b   :  { %299 = vpow2.f32 %v266_v40 }
  0x28   :  { %v300_v44 = vpop.eup %299 }
  0x29   :  { %v67_v45 = vadd.f32 1.0, %v300_v44 }
  0x9a   :  { %v35_v11 = vpop.xlane.xlu0 %34 }
  0x9b   :  { %v37_v12 = vmul.f32 0.03125, %v35_v11 }
  0x9d   :  { %v38_v13 = vsub.f32 %v30_v6, %v37_v12  ;;  %v156_v6 = vrot.slane %v81_v61, %v155_v0 }
  0x9f   :  { %v39_v14 = vmul.f32 %v38_v13, %v38_v13 }
  0xa1   :  { %v40_v15 = vsel %vm32_vm1, %v39_v14, 0.0 }
  0xa2   :  { %41 = vadd.xlane.f32.xlu1 %v40_v15 }
  0xd8   :  { %v127_v16 = vpop.f32.mrf.mxu0 }
  0xd9   :  { %v134_v17 = vsel %vm133_vm3, %v127_v16, 0.0 }
  0xda   :  { %v282_v18 = vpop.f32.mrf.mxu0  ;;  %135 = vadd.xlane.f32.xlu0 %v134_v17 }
  0xdc   :  { %v130_v19 = vpop.f32.mrf.mxu0 }
  0xde   :  { %v283_v20 = vpop.f32.mrf.mxu0 }
 0x12b   :  { %v42_v41 = vpop.xlane.xlu1 %41 }
 0x12c   :  { %v43_v42 = vmul.f32 0.03125, %v42_v41 }
 0x12e   :  { %v44_v43 = vadd.f32 1e-05, %v43_v42 }
 0x130   :  { %301 = vrsqrt.f32 %v44_v43 }
 0x131   :  { %303 = vrcp.f32 %v67_v45 }
 0x13d   :  { %v302_v46 = vpop.eup %301 }
 0x13e   :  { %v46_v47 = vmul.f32 %v302_v46, %v38_v13  ;;  %v304_v55 = vpop.eup %303 }
 0x140   :  { %v48_v49 = vmul.f32 %v47_v48, %v46_v47 }
 0x142   :  { %v50_v53 = vadd.f32 %v49_v50, %v48_v49 }
 0x144   :  { %v70_v57 = vmul.f32 %v304_v55, %v50_v53 }
 0x146   :  { %v72_v59 = vrot.slane %v70_v57, 2  ;;  %v76_v63 = vmax.f32 %v70_v57, 0.0 }
 0x148   :  { %v74_v62 = vadd.f32 %v72_v59, %v70_v57  ;;  %v78_v5 = vrot.slane %v76_v63, 4 }
 0x14a   :  { %v75_v4 = vmax.f32 %v74_v62, 0.0 }
 0x14c   :  { %v80_v9 = vsub.f32 %v75_v4, %v78_v5 }
 0x163   :  { %v136_v21 = vpop.xlane.xlu0 %135 }
 0x164   :  { %v138_v22 = vmul.f32 0.015625, %v136_v21 }
 0x166   :  { %v139_v23 = vsub.f32 %v127_v16, %v138_v22 }
 0x168   :  { %v140_v24 = vmul.f32 %v139_v23, %v139_v23 }
 0x16a   :  { %v141_v25 = vsel %vm133_vm3, %v140_v24, 0.0 }
 0x16b   :  { %142 = vadd.xlane.f32.xlu1 %v141_v25 }
 0x1f4   :  { %v143_v51 = vpop.xlane.xlu1 %142 }
 0x1f5   :  { %v144_v52 = vmul.f32 0.015625, %v143_v51 }
 0x1f7   :  { %v145_v54 = vadd.f32 1e-05, %v144_v52 }
 0x1f9   :  { %305 = vrsqrt.f32 %v145_v54 }
 0x206   :  { %v306_v2 = vpop.eup %305 }
 0x207   :  { %v147_v3 = vmul.f32 %v306_v2, %v139_v23 }
 0x209   :  { %v152_v7 = vmul.f32 %v151_v1, %v147_v3 }
 0x20b   :  { %v157_v10 = vadd.f32 %v156_v6, %v152_v7 }
 0x20d   :  { %v158_v11 = vadd.f32 %v157_v10, %v80_v9 }
 0x20f   :  { %v159_v12 = vmax.f32 %v158_v11, 0.0 }
 0x211   :  { %v161_v13 = vpack.c.bf16 %v159_v12, %v159_v12 }
 0x213   :  { %289 = vmatmul.mubr.msk.bf16.vlgmr.msra.gmra.mxu1 %vm89_vm2, %v161_v13 }
 0x2d3   :  { %v205_v14 = vpop.f32.mrf.mxu1 }
 0x2d4   :  { %v212_v15 = vsel %vm211_vm6, %v205_v14, 0.0 }
 0x2d5   :  { %213 = vadd.xlane.f32.xlu0 %v212_v15  ;;  %v290_v16 = vpop.f32.mrf.mxu1 }
 0x2d7   :  { %v208_v17 = vpop.f32.mrf.mxu1 }
 0x2d9   :  { %v291_v18 = vpop.f32.mrf.mxu1 }
 0x2eb   :  { %236 = vrot.lane.b32.xlu0 %v157_v10, %s362_s0 }
 0x35e   :  { %v214_v19 = vpop.xlane.xlu0 %213 }
 0x35f   :  { %v215_v20 = vmul.f32 0.03125, %v214_v19 }
 0x361   :  { %v216_v21 = vsub.f32 %v205_v14, %v215_v20 }
 0x362   :  { %v237_v34 = vpop.permute.xlu0 %236 }
 0x363   :  { %v217_v22 = vmul.f32 %v216_v21, %v216_v21 }
 0x365   :  { %v218_v23 = vsel %vm211_vm6, %v217_v22, 0.0 }
 0x366   :  { %219 = vadd.xlane.f32.xlu1 %v218_v23 }
 0x3ef   :  { %v220_v24 = vpop.xlane.xlu1 %219 }
 0x3f0   :  { %v221_v25 = vmul.f32 0.03125, %v220_v24 }
 0x3f2   :  { %v222_v26 = vadd.f32 1e-05, %v221_v25 }
 0x3f4   :  { %307 = vrsqrt.f32 %v222_v26 }
 0x401   :  { %v308_v29 = vpop.eup %307 }
 0x402   :  { %v224_v31 = vmul.f32 %v308_v29, %v216_v21 }
 0x404   :  { %v229_v32 = vmul.f32 %v228_v28, %v224_v31 }
 0x406   :  { %v234_v33 = vadd.f32 %v233_v30, %v229_v32 }
 0x408   :  { %v239_v35 = vadd.f32 %v237_v34, %v234_v33 }
 0x40a   :  { %v269_v36 = vmul.f32 -1.442695, %v239_v35 }
 0x40c   :  { %309 = vpow2.f32 %v269_v36 }
 0x419   :  { %v310_v37 = vpop.eup %309 }
 0x41a   :  { %v243_v38 = vadd.f32 1.0, %v310_v37 }
 0x41c   :  { %311 = vrcp.f32 %v243_v38 }
 0x429   :  { %v312_v39 = vpop.eup %311 }
 0x42a   :  { %v246_v40 = vsub.f32 1.0, %v312_v39  ;;  %v248_v42 = vmul.f32 %v312_v39, %v159_v12 }
 0x42c   :  { %v247_v41 = vmul.f32 %v246_v40, %v393_v8 }
 0x42e   :  { %v249_v43 = vadd.f32 %v248_v42, %v247_v41 }
 0x430   :  { %250 = vst.msk [vmem:[#allocation5] sm:$0x3] %vm211_vm6, %v249_v43 }
 0x431   :  { %344 = shalt.err (!%p341_p9)
}
 0x432   :  { %260 = dma.vmem_to_hbm [thread:$0]  %s258_s22, 32, %s414_s3, [#allocation4]  }
 0x433   :  { %355 = dma.done.wait [#allocation4], 32  }
 0x434   :  { %356 = vsyncadd [#allocation4], 4294967264 }
 0x435   :  { %264 = vsyncpa [#allocation3], 1 }
 0x436   :  { %265 = vsyncpa [#allocation4], 1 }

</bundles_post_ra>
